<compile_context>
chip_gen: v7x
topology: tpu7x:2x2x1
jax: 0.10.0
libtpu: 0.0.40
codegen_flags: <defaults>
</compile_context>

<pallas_src>
import functools

import jax
import jax.numpy as jnp
from jax.experimental import pallas as pl
from jax.experimental.pallas import tpu as pltpu


def _round_up(x: int, m: int) -> int:
    return ((x + m - 1) // m) * m


# ----------------------------- Pallas kernel -------------------------------

def _net_kernel(num_users,                    # static (bound via partial)
                idx_ref,                      # (TB, 2)  int32 user/item ids
                ew_ref,                       # (NU+NI, 64) bf16 folded emb@W1
                b1_ref,                       # (1, 64)  f32
                w2_ref, b2_ref,               # (64, 32) bf16, (1, 32) f32
                w3_ref, b3_ref,               # (1, 32)  f32,  (1, 1) f32
                o_ref):                       # (TB, 1)  f32
    tb = idx_ref.shape[0]
    ntot = ew_ref.shape[0]                    # NU + NI

    # ---- fused gather + fc1: single two-hot matmul on the MXU ---------------
    uid = idx_ref[:, 0:1]                                  # (TB, 1) int32
    iid = idx_ref[:, 1:2] + num_users                      # (TB, 1) int32
    iota = jax.lax.broadcasted_iota(jnp.int32, (tb, ntot), 1)
    # bool compare -> bf16 directly (no f32 select intermediate).
    twohot = ((iota == uid) | (iota == iid)).astype(jnp.bfloat16)
    # 1.0 * bf16 row accumulated in f32 => exact sum of the two selected rows.
    h1 = jnp.dot(twohot, ew_ref[...],
                 preferred_element_type=jnp.float32) + b1_ref[...]
    h1 = jnp.maximum(h1, 0.0)                              # (TB, 64) f32

    # ---- fc2 -----------------------------------------------------------------
    h2 = jnp.dot(h1.astype(jnp.bfloat16), w2_ref[...],
                 preferred_element_type=jnp.float32) + b2_ref[...]
    h2 = jnp.maximum(h2, 0.0)                              # (TB, 32) f32

    # ---- fc3 on VPU/XLU: multiply + lane reduce (no MXU pass for N=1) --------
    logit = jnp.sum(h2 * w3_ref[...], axis=-1, keepdims=True) + b3_ref[...]

    # (TB, 1) output -> masked stores; accepted (kernel is not store bound).
    o_ref[...] = jax.nn.sigmoid(logit) * 4.0 + 1.0


def _net_pallas(idx, ew, b1, w2, b2, w3, b3, *, num_users, tb):
    Bp = idx.shape[0]
    grid = (Bp // tb,)

    def pinned(a):
        # Whole (2-D) array resident in VMEM; same block for every grid step.
        return pl.BlockSpec(a.shape, lambda i: (0, 0))

    return pl.pallas_call(
        functools.partial(_net_kernel, num_users),
        out_shape=jax.ShapeDtypeStruct((Bp, 1), jnp.float32),
        grid=grid,
        in_specs=[
            pl.BlockSpec((tb, 2), lambda i: (i, 0)),     # streamed index tile
            pinned(ew), pinned(b1),
            pinned(w2), pinned(b2),
            pinned(w3), pinned(b3),
        ],
        out_specs=pl.BlockSpec((tb, 1), lambda i: (i, 0)),
        compiler_params=pltpu.CompilerParams(
            dimension_semantics=("parallel",),   # shard batch tiles across TCs
            vmem_limit_bytes=32 * 1024 * 1024,   # v5e default is 16 MiB
        ),
    )(idx, ew, b1, w2, b2, w3, b3)


# ----------------------------- Parameter init ------------------------------

def _xavier_uniform(key, shape, dtype=jnp.float32):
    # torch.nn.init.xavier_uniform_: U(-a, a), a = sqrt(6/(fan_in+fan_out));
    # weights stored in torch layout (out, in).
    fan_out, fan_in = shape
    a = (6.0 / (fan_in + fan_out)) ** 0.5
    return jax.random.uniform(key, shape, dtype, minval=-a, maxval=a)


def init_params(key, num_users, num_items, embedding_dim=128):
    ks = jax.random.split(key, 8)
    return {
        "user_embedding": _xavier_uniform(ks[0], (num_users, embedding_dim)),
        "item_embedding": _xavier_uniform(ks[1], (num_items, embedding_dim)),
        "fc1_w": _xavier_uniform(ks[2], (64, embedding_dim * 2)),
        "fc2_w": _xavier_uniform(ks[3], (32, 64)),
        "fc3_w": _xavier_uniform(ks[4], (1, 32)),
        # nn.Linear default bias init: U(-1/sqrt(fan_in), 1/sqrt(fan_in))
        "fc1_b": jax.random.uniform(ks[5], (64,), jnp.float32,
                                    minval=-(embedding_dim * 2) ** -0.5,
                                    maxval=(embedding_dim * 2) ** -0.5),
        "fc2_b": jax.random.uniform(ks[6], (32,), jnp.float32,
                                    minval=-64.0 ** -0.5, maxval=64.0 ** -0.5),
        "fc3_b": jax.random.uniform(ks[7], (1,), jnp.float32,
                                    minval=-32.0 ** -0.5, maxval=32.0 ** -0.5),
    }


def prepare_params(params):
    """One-time (outside jit) fold + conversion to kernel layout / dtypes."""
    d = params["user_embedding"].shape[1]
    w1t = params["fc1_w"].T                                   # (2D, 64) f32
    # Fold embeddings into fc1 (f32 product, then one bf16 rounding).
    uw = params["user_embedding"] @ w1t[:d]                   # (NU, 64) f32
    iw = params["item_embedding"] @ w1t[d:]                   # (NI, 64) f32
    return {
        "ew": jnp.concatenate([uw, iw], axis=0).astype(jnp.bfloat16),
        "b1": params["fc1_b"].reshape(1, -1).astype(jnp.float32),
        "w2": params["fc2_w"].T.astype(jnp.bfloat16),         # (64, 32)
        "b2": params["fc2_b"].reshape(1, -1).astype(jnp.float32),
        "w3": params["fc3_w"].astype(jnp.float32),            # (1, 32) VPU row
        "b3": params["fc3_b"].reshape(1, 1).astype(jnp.float32),
    }


# ----------------------------- Forward pass --------------------------------

@functools.partial(jax.jit, static_argnames=("num_users", "tb"))
def net_forward(prep, x, *, num_users, tb=8192):
    # x : (B, 2) integer tensor -> [:,0] user idx, [:,1] item idx
    B = x.shape[0]
    idx = x.astype(jnp.int32)

    Bp8 = _round_up(B, 8)
    if Bp8 > 8:
        # Guarantee >= 2 grid tiles so both v7x TensorCores get work; cap at tb.
        tb_eff = min(tb, _round_up(-(-Bp8 // 2), 8))
    else:
        tb_eff = min(tb, 8)
    tb_eff = max(8, (tb_eff // 8) * 8)          # tile = multiple of 8 sublanes

    Bp = _round_up(B, tb_eff)
    if Bp != B:
        idx = jnp.pad(idx, ((0, Bp - B), (0, 0)))   # pad tail with valid index 0

    out = _net_pallas(idx, prep["ew"], prep["b1"],
                      prep["w2"], prep["b2"], prep["w3"], prep["b3"],
                      num_users=num_users, tb=tb_eff)
    return out[:B]


# -------- Pure-JAX references (sanity checks, not part of the hot path) -----

def net_forward_ref_f32(params, x):
    """Original f32 semantics (matches the PyTorch module)."""
    uid = x[:, 0].astype(jnp.int32)
    iid = x[:, 1].astype(jnp.int32)
    ue = jnp.take(params["user_embedding"], uid, axis=0)
    ie = jnp.take(params["item_embedding"], iid, axis=0)
    h = jnp.concatenate([ue, ie], axis=1)
    h = jax.nn.relu(h @ params["fc1_w"].T + params["fc1_b"])
    h = jax.nn.relu(h @ params["fc2_w"].T + params["fc2_b"])
    return jax.nn.sigmoid(h @ params["fc3_w"].T + params["fc3_b"]) * 4.0 + 1.0


def net_forward_ref_mirror(prep, x, num_users):
    """Mirrors the kernel's folded bf16-storage / f32-accumulate strategy."""
    uid = x[:, 0].astype(jnp.int32)
    iid = x[:, 1].astype(jnp.int32) + num_users
    h1 = (jnp.take(prep["ew"], uid, axis=0).astype(jnp.float32)
          + jnp.take(prep["ew"], iid, axis=0).astype(jnp.float32)
          + prep["b1"])
    h1 = jnp.maximum(h1, 0.0)
    h2 = jnp.dot(h1.astype(jnp.bfloat16), prep["w2"],
                 preferred_element_type=jnp.float32) + prep["b2"]
    h2 = jnp.maximum(h2, 0.0)
    logit = jnp.sum(h2 * prep["w3"], axis=-1, keepdims=True) + prep["b3"]
    return jax.nn.sigmoid(logit) * 4.0 + 1.0


# --------------------------------- Main ------------------------------------

if __name__ == "__main__":
    NUM_USERS, NUM_ITEMS, EMB_DIM, BATCH = 16, 32, 128, 21

    key = jax.random.PRNGKey(0)
    pkey, ukey, ikey = jax.random.split(key, 3)
    params = init_params(pkey, NUM_USERS, NUM_ITEMS, EMB_DIM)
    prep = prepare_params(params)

    user_idx = jax.random.randint(ukey, (BATCH,), 0, NUM_USERS, dtype=jnp.int32)
    item_idx = jax.random.randint(ikey, (BATCH,), 0, NUM_ITEMS, dtype=jnp.int32)
    x = jnp.stack([user_idx, item_idx], axis=1)   # (B, 2) int32

    # Default run (B=21 -> 2 tiles of 16 with tail padding) and an explicit
    # small-tile run (tb=8 -> 3-step grid) to exercise tiling + padding paths.
    out = jax.block_until_ready(net_forward(prep, x, num_users=NUM_USERS))
    out_tiled = jax.block_until_ready(
        net_forward(prep, x, num_users=NUM_USERS, tb=8))

    ref_mirror = net_forward_ref_mirror(prep, x, NUM_USERS)
    ref_f32 = net_forward_ref_f32(params, x)

    assert out.shape == (BATCH, 1)
    assert jnp.all(jnp.isfinite(out))
    assert jnp.allclose(out, out_tiled, atol=1e-5, rtol=1e-5)
    # Folded bf16-mirror reference: should match tightly.
    assert jnp.allclose(out, ref_mirror, atol=1e-3, rtol=1e-3)
    # f32 reference: widened tolerance because the folded table/weights are bf16.
    assert jnp.allclose(out, ref_f32, atol=5e-2, rtol=5e-2)

    print("KERNEL_OK")
</pallas_src>

<mosaic_0001>
module attributes {stable_mosaic.version = 11 : i64} {
  func.func @_net_kernel(%arg0: i32, %arg1: memref<16x2xi32, #tpu.memory_space<vmem>>, %arg2: memref<48x64xbf16, #tpu.memory_space<vmem>>, %arg3: memref<1x64xf32, #tpu.memory_space<vmem>>, %arg4: memref<64x32xbf16, #tpu.memory_space<vmem>>, %arg5: memref<1x32xf32, #tpu.memory_space<vmem>>, %arg6: memref<1x32xf32, #tpu.memory_space<vmem>>, %arg7: memref<1x1xf32, #tpu.memory_space<vmem>>, %arg8: memref<16x1xf32, #tpu.memory_space<vmem>>) attributes {dimension_semantics = [#tpu.dimension_semantics<parallel>], iteration_bounds = array<i64: 2>, scalar_prefetch = 0 : i64, scratch_operands = 0 : i64, tpu.core_type = #tpu.core_type<tc>, window_params = [{transform_indices = @transform_0, window_bounds = array<i64: 16, 2>}, {pipeline_mode = #tpu.pipeline_mode<synchronous>, transform_indices = @transform_1, window_bounds = array<i64: 48, 64>}, {pipeline_mode = #tpu.pipeline_mode<synchronous>, transform_indices = @transform_2, window_bounds = array<i64: 1, 64>}, {pipeline_mode = #tpu.pipeline_mode<synchronous>, transform_indices = @transform_3, window_bounds = array<i64: 64, 32>}, {pipeline_mode = #tpu.pipeline_mode<synchronous>, transform_indices = @transform_4, window_bounds = array<i64: 1, 32>}, {pipeline_mode = #tpu.pipeline_mode<synchronous>, transform_indices = @transform_5, window_bounds = array<i64: 1, 32>}, {pipeline_mode = #tpu.pipeline_mode<synchronous>, transform_indices = @transform_6, window_bounds = array<i64: 1, 1>}, {transform_indices = @transform_7, window_bounds = array<i64: 16, 1>}]} {
    %c0 = arith.constant 0 : index
    %c0_0 = arith.constant 0 : index
    %0 = vector.load %arg1[%c0, %c0_0] : memref<16x2xi32, #tpu.memory_space<vmem>>, vector<16x1xi32>
    %c0_1 = arith.constant 0 : index
    %c1 = arith.constant 1 : index
    %1 = vector.load %arg1[%c0_1, %c1] : memref<16x2xi32, #tpu.memory_space<vmem>>, vector<16x1xi32>
    %c16_i32 = arith.constant 16 : i32
    %2 = vector.broadcast %c16_i32 : i32 to vector<16x1xi32>
    %3 = arith.addi %1, %2 : vector<16x1xi32>
    %4 = tpu.iota {dimensions = array<i32: 1>} : vector<16x48xi32>
    %5 = vector.broadcast %0 : vector<16x1xi32> to vector<16x48xi32>
    %6 = arith.cmpi eq, %4, %5 : vector<16x48xi32>
    %7 = vector.broadcast %3 : vector<16x1xi32> to vector<16x48xi32>
    %8 = arith.cmpi eq, %4, %7 : vector<16x48xi32>
    %9 = arith.ori %6, %8 : vector<16x48xi1>
    %10 = arith.extui %9 : vector<16x48xi1> to vector<16x48xi32>
    %11 = arith.sitofp %10 : vector<16x48xi32> to vector<16x48xf32>
    %12 = arith.truncf %11 : vector<16x48xf32> to vector<16x48xbf16>
    %c0_2 = arith.constant 0 : index
    %c0_3 = arith.constant 0 : index
    %13 = vector.load %arg2[%c0_2, %c0_3] : memref<48x64xbf16, #tpu.memory_space<vmem>>, vector<48x64xbf16>
    %cst = arith.constant dense<0.000000e+00> : vector<16x64xf32>
    %14 = tpu.matmul %12, %13, %cst {dimension_numbers = #tpu.dot_dimension_numbers<[1], [0], [0], [1], [0, 0, 1, 1], [], []>} : vector<16x48xbf16>, vector<48x64xbf16>, vector<16x64xf32> -> vector<16x64xf32>
    %c0_4 = arith.constant 0 : index
    %c0_5 = arith.constant 0 : index
    %15 = vector.load %arg3[%c0_4, %c0_5] : memref<1x64xf32, #tpu.memory_space<vmem>>, vector<1x64xf32>
    %16 = vector.broadcast %15 : vector<1x64xf32> to vector<16x64xf32>
    %17 = arith.addf %14, %16 : vector<16x64xf32>
    %cst_6 = arith.constant 0.000000e+00 : f32
    %18 = vector.broadcast %cst_6 : f32 to vector<16x64xf32>
    %19 = arith.maximumf %17, %18 : vector<16x64xf32>
    %20 = arith.truncf %19 : vector<16x64xf32> to vector<16x64xbf16>
    %c0_7 = arith.constant 0 : index
    %c0_8 = arith.constant 0 : index
    %21 = vector.load %arg4[%c0_7, %c0_8] : memref<64x32xbf16, #tpu.memory_space<vmem>>, vector<64x32xbf16>
    %cst_9 = arith.constant dense<0.000000e+00> : vector<16x32xf32>
    %22 = tpu.matmul %20, %21, %cst_9 {dimension_numbers = #tpu.dot_dimension_numbers<[1], [0], [0], [1], [0, 0, 1, 1], [], []>} : vector<16x64xbf16>, vector<64x32xbf16>, vector<16x32xf32> -> vector<16x32xf32>
    %c0_10 = arith.constant 0 : index
    %c0_11 = arith.constant 0 : index
    %23 = vector.load %arg5[%c0_10, %c0_11] : memref<1x32xf32, #tpu.memory_space<vmem>>, vector<1x32xf32>
    %24 = vector.broadcast %23 : vector<1x32xf32> to vector<16x32xf32>
    %25 = arith.addf %22, %24 : vector<16x32xf32>
    %cst_12 = arith.constant 0.000000e+00 : f32
    %26 = vector.broadcast %cst_12 : f32 to vector<16x32xf32>
    %27 = arith.maximumf %25, %26 : vector<16x32xf32>
    %c0_13 = arith.constant 0 : index
    %c0_14 = arith.constant 0 : index
    %28 = vector.load %arg6[%c0_13, %c0_14] : memref<1x32xf32, #tpu.memory_space<vmem>>, vector<1x32xf32>
    %29 = vector.broadcast %28 : vector<1x32xf32> to vector<16x32xf32>
    %30 = arith.mulf %27, %29 : vector<16x32xf32>
    %cst_15 = arith.constant dense<0.000000e+00> : vector<16xf32>
    %31 = vector.multi_reduction <add>, %30, %cst_15 [1] : vector<16x32xf32> to vector<16xf32>
    %32 = vector.shape_cast %31 : vector<16xf32> to vector<16x1xf32>
    %c0_16 = arith.constant 0 : index
    %c0_17 = arith.constant 0 : index
    %33 = vector.load %arg7[%c0_16, %c0_17] : memref<1x1xf32, #tpu.memory_space<vmem>>, vector<1x1xf32>
    %34 = vector.broadcast %33 : vector<1x1xf32> to vector<16x1xf32>
    %35 = arith.addf %32, %34 : vector<16x1xf32>
    %36 = arith.negf %35 : vector<16x1xf32>
    %37 = math.exp %36 : vector<16x1xf32>
    %cst_18 = arith.constant 1.000000e+00 : f32
    %38 = vector.broadcast %cst_18 : f32 to vector<16x1xf32>
    %39 = arith.addf %38, %37 : vector<16x1xf32>
    %40 = arith.divf %38, %39 : vector<16x1xf32>
    %cst_19 = arith.constant 4.000000e+00 : f32
    %41 = vector.broadcast %cst_19 : f32 to vector<16x1xf32>
    %42 = arith.mulf %40, %41 : vector<16x1xf32>
    %cst_20 = arith.constant 1.000000e+00 : f32
    %43 = vector.broadcast %cst_20 : f32 to vector<16x1xf32>
    %44 = arith.addf %42, %43 : vector<16x1xf32>
    %c0_21 = arith.constant 0 : index
    %c0_22 = arith.constant 0 : index
    %45 = vector.load %arg8[%c0_21, %c0_22] : memref<16x1xf32, #tpu.memory_space<vmem>>, vector<16x1xf32>
    tpu.vector_store %arg8[%c0_21, %c0_22], %44 {strides = array<i32>} : memref<16x1xf32, #tpu.memory_space<vmem>>, vector<16x1xf32>,
    return
  }
  func.func @transform_0(%arg0: i32) -> (i32, i32) {
    %c0_i32 = arith.constant 0 : i32
    %c0_i32_0 = arith.constant 0 : i32
    return %arg0, %c0_i32 : i32, i32
  }
  func.func @transform_1(%arg0: i32) -> (i32, i32) {
    %c0_i32 = arith.constant 0 : i32
    %c0_i32_0 = arith.constant 0 : i32
    %c0_i32_1 = arith.constant 0 : i32
    return %c0_i32, %c0_i32_0 : i32, i32
  }
  func.func @transform_2(%arg0: i32) -> (i32, i32) {
    %c0_i32 = arith.constant 0 : i32
    %c0_i32_0 = arith.constant 0 : i32
    %c0_i32_1 = arith.constant 0 : i32
    return %c0_i32, %c0_i32_0 : i32, i32
  }
  func.func @transform_3(%arg0: i32) -> (i32, i32) {
    %c0_i32 = arith.constant 0 : i32
    %c0_i32_0 = arith.constant 0 : i32
    %c0_i32_1 = arith.constant 0 : i32
    return %c0_i32, %c0_i32_0 : i32, i32
  }
  func.func @transform_4(%arg0: i32) -> (i32, i32) {
    %c0_i32 = arith.constant 0 : i32
    %c0_i32_0 = arith.constant 0 : i32
    %c0_i32_1 = arith.constant 0 : i32
    return %c0_i32, %c0_i32_0 : i32, i32
  }
  func.func @transform_5(%arg0: i32) -> (i32, i32) {
    %c0_i32 = arith.constant 0 : i32
    %c0_i32_0 = arith.constant 0 : i32
    %c0_i32_1 = arith.constant 0 : i32
    return %c0_i32, %c0_i32_0 : i32, i32
  }
  func.func @transform_6(%arg0: i32) -> (i32, i32) {
    %c0_i32 = arith.constant 0 : i32
    %c0_i32_0 = arith.constant 0 : i32
    %c0_i32_1 = arith.constant 0 : i32
    return %c0_i32, %c0_i32_0 : i32, i32
  }
  func.func @transform_7(%arg0: i32) -> (i32, i32) {
    %c0_i32 = arith.constant 0 : i32
    %c0_i32_0 = arith.constant 0 : i32
    return %arg0, %c0_i32 : i32, i32
  }
}

</mosaic_0001>

<bundles_post_ra>
// kernel: net_forward.1
= control target key start
LH: loop header
LB: loop body
LE: loop exit
PB: predicated region body
PF: predicated region fallthrough
CT: control target
= control target key end

     0   :  { %s723_s26 = smov 0   ;;  %s777_s0 = inlined_call_operand.vmem [shape: s32[32,2], index: 0, kind: input, shape index: {}]   ;;  %s778_s1 = inlined_call_operand.vmem [shape: bf16[48,64], index: 1, kind: input, shape index: {}]   ;;  %s779_s2 = inlined_call_operand.vmem [shape: f32[1,64], index: 2, kind: input, shape index: {}]   ;;  %s780_s3 = inlined_call_operand.vmem [shape: bf16[64,32], index: 3, kind: input, shape index: {}]   ;;  %s781_s4 = inlined_call_operand.vmem [shape: f32[1,32], index: 4, kind: input, shape index: {}]   ;;  %s782_s5 = inlined_call_operand.vmem [shape: f32[1,32], index: 5, kind: input, shape index: {}]   ;;  %s783_s6 = inlined_call_operand.<no memory space> [shape: f32[1,1], index: 6, kind: input, shape index: {}]   ;;  %s784_s7 = inlined_call_operand.vmem [shape: f32[32,1], index: 7, kind: output, shape index: {}]  }
   0x1   :  { %v12_v0 = vstv %s783_s6 }
   0x2   :  { %13 = vst [vmem:[#allocation2] sm:$0x1] %v12_v0 }
   0x3 LB: > { %s579_s27 = sadd.s32 4294967295, %s674_s26   ;;  %p583_p0 = scmp.ge.s32.totalorder %s674_s26, 1  ;;  %s674_s26 = sphi %s723_s26, %s19_s26  }
   0x4   : > { %p240_p1 = scmp.lt.s32.totalorder %s674_s26, 3 }
   0x6   : > { %p241_p2 = pnand %p583_p0, %p240_p1 }
   0x7   : > { %s584_s28 = sshll.u32 (!%p241_p2), %s579_s27, 1  ;;  %v676_v1 = vmov (!%p241_p2), 0   ;;  %v677_v2 = vmov (!%p241_p2), 1   ;;  %v678_v3 = vmov (!%p241_p2), 0.0   ;;  %v653_v4 = vld [vmem:[%s778_s1] sm:$0xff] (!%p241_p2)   ;;  %v654_v9 = vld [vmem:[%s778_s1 + $0x8] sm:$0xff] (!%p241_p2)   ;;  %v289_v13 = vlaneseq (!%p241_p2) }
   0x8   : > { %244 = sbr.rel (%p241_p2) target bundleno = 774 (0x306), region = 48  ;;  %650 = vset.pattern.permute.xlu0 (!%p241_p2), %v676_v1  ;;  %p273_p3 = scmp.lt.s32.totalorder (!%p241_p2), %s584_s28, 3  ;;  %651 = vset.pattern.permute.xlu1 (!%p241_p2), %v677_v2  ;;  %v655_v10 = vld [vmem:[%s778_s1 + $0x10] sm:$0xff] (!%p241_p2)   ;;  %vm679_vm0 = vmmov (!%p241_p2), 0   ;;  %v656_v11 = vld [vmem:[%s780_s3] sm:$0xff] (!%p241_p2)   ;;  %v657_v12 = vld [vmem:[%s780_s3 + $0x8] sm:$0xff] (!%p241_p2)  }
   0x9   : > { %616 = vmatprep.subr.bf16.mxu0 (!%p241_p2), %v678_v3  ;;  %626 = vmatprep.subr.bf16.mxu1 (!%p241_p2), %v678_v3  ;;  %v290_v14 = vand.u32 (!%p241_p2), 127, %v289_v13  ;;  %vm345_vm7 = vcmask (!%p241_p2), 392192   ;;  %v658_v22 = vld [vmem:[%s780_s3 + $0x10] sm:$0xff] (!%p241_p2)   ;;  %v659_v23 = vld [vmem:[%s780_s3 + $0x18] sm:$0xff] (!%p241_p2)   ;;  %v590_v24 = vld [vmem:[%s779_s2] ss:$0 sm:$0xff] (!%p241_p2) }
   0xa   : > { %617 = vmatpush3.bf16.msra.mxu0 (!%p241_p2), %v653_v4  ;;  %622 = vmatprep.mubr.msk.bf16.mxu0 (!%p241_p2), %vm679_vm0, %v678_v3  ;;  %vm432_vm8 = vcmask (!%p241_p2), 523264   ;;  %v595_v34 = vld [vmem:[%s781_s4] ss:$0 sm:$0xff] (!%p241_p2)  ;;  %vm488_vm9 = vcmask (!%p241_p2), 261120   ;;  %vm520_vm10 = vcmask (!%p241_p2), 7168  }
   0xb   : > { %618 = vmatprep.subr.bf16.mxu0 (!%p241_p2), %v678_v3  ;;  %634 = vmatprep.mubr.msk.bf16.mxu1 (!%p241_p2), %vm679_vm0, %v678_v3  ;;  %v601_v39 = vld [vmem:[%s782_s5] ss:$0 sm:$0xff] (!%p241_p2) }
   0xc   : > { %627 = vmatpush3.bf16.msra.mxu1 (!%p241_p2), %v656_v11  ;;  %v602_v48 = vld [vmem:[#allocation2] ss:$0 sm:$0xff] (!%p241_p2) }
   0xd   : > { %628 = vmatprep.subr.bf16.mxu1 (!%p241_p2), %v678_v3 }
   0xe   : > { %619 = vmatpush3.bf16.msra.mxu0 (!%p241_p2), %v654_v9 }
   0xf   : > { %s786_s28 = smov (!%p273_p3, %s584_s28), 3  ;;  %620 = vmatprep.subr.bf16.mxu0 %v678_v3 }
  0x10   : > { %s585_s6 = sshll.u32 %s786_s28, 3  ;;  %629 = vmatpush3.bf16.msra.mxu1 %v657_v12 }
  0x11   : > { %s276_s8 = scalar_lea.vmem %s777_s0, %s585_s6  ;;  %630 = vmatprep.subr.bf16.mxu1 %v678_v3  ;;  %s282_s10 = scalar_lea.vmem %s784_s7, %s585_s6 }
  0x12   : > { %v285_v5 = vld [vmem:[%s276_s8] sm:$0xff]  ;;  %v286_v6 = vld [vmem:[%s276_s8 + $0x8] sm:$0xff]  ;;  %621 = vmatpush3.bf16.msra.mxu0 %v655_v10 }
  0x13   : > { %292 = vperm.xlu0 %650, %v285_v5   ;;  %v287_v7 = vadd.s32 16, %v285_v5  ;;  %v288_v8 = vadd.s32 16, %v286_v6 }
  0x14   : > { %631 = vmatpush3.bf16.msra.mxu1 %v658_v22 }
  0x15   : > { %300 = vperm.xlu1 %651, %v287_v7   ;;  %632 = vmatprep.subr.bf16.mxu1 %v678_v3 }
  0x17   : > { %295 = vperm.xlu0 %650, %v286_v6  }
  0x18   : > { %633 = vmatpush3.bf16.msra.mxu1 %v659_v23 }
  0x19   : > { %303 = vperm.xlu1 %651, %v288_v8  }
  0x1b   : > { %652 = vset.pattern.permute.xlu0 %v677_v2 }
  0x92   : > { %v293_v15 = vpop.permute.xlu0 %292 }
  0x93   : > { %vm297_vm1 = vcmp.eq.s32.totalorder %v290_v14, %v293_v15 }
  0x94   : > { %v301_v16 = vpop.permute.xlu1 %300 }
  0x95   : > { %vm305_vm2 = vcmp.eq.s32.totalorder %v290_v14, %v301_v16 }
  0x96   : > { %v296_v17 = vpop.permute.xlu0 %295  ;;  %vm307_vm3 = vmor %vm297_vm1, %vm305_vm2 }
  0x97   : > { %vm298_vm4 = vcmp.eq.s32.totalorder %v290_v14, %v296_v17  ;;  %v588_v19 = vsel %vm307_vm3, 1.0, %v678_v3 }
  0x98   : > { %v304_v18 = vpop.permute.xlu1 %303 }
  0x99   : > { %vm306_vm5 = vcmp.eq.s32.totalorder %v290_v14, %v304_v18 }
  0x9a   : > { %vm308_vm6 = vmor %vm298_vm4, %vm306_vm5 }
  0x9b   : > { %v589_v20 = vsel %vm308_vm6, 1.0, %v678_v3 }
  0x9c   : > { %v313_v21 = vpack.c.bf16 %v589_v20, %v588_v19 }
  0x9e   : > { %623 = vmatmul.mubr.msk.bf16.vlgmr.msra.gmra.mrb[0].mxu0 %vm345_vm7, %v313_v21 }
 0x171   : > { %v383_v25 = vpop.f32.mrb[0].mxu0 }
 0x172   : > { %v384_v26 = vadd.f32 %v590_v24, %v383_v25  ;;  %v624_v27 = vpop.f32.mrb[1].mxu0 }
 0x173   : > { %v386_v28 = vpop.f32.mrb[2].mxu0 }
 0x174   : > { %v387_v29 = vadd.f32 %v590_v24, %v386_v28  ;;  %v625_v30 = vpop.f32.mrb[3].mxu0  ;;  %v390_v31 = vmax.f32 %v384_v26, 0.0 }
 0x176   : > { %v391_v32 = vmax.f32 %v387_v29, 0.0 }
 0x178   : > { %v392_v33 = vpack.c.bf16 %v391_v32, %v390_v31 }
 0x17a   : > { %635 = vmatmul.mubr.msk.bf16.vlgmr.msra.gmra.mrb[0].mxu1 %vm432_vm8, %v392_v33 }
 0x24d   : > { %v470_v35 = vpop.f32.mrb[0].mxu1 }
 0x24e   : > { %v471_v36 = vadd.f32 %v595_v34, %v470_v35  ;;  %v636_v37 = vpop.f32.mrb[1].mxu1 }
 0x24f   : > { %v473_v38 = vpop.f32.mrb[2].mxu1 }
 0x250   : > { %v477_v40 = vmax.f32 %v471_v36, 0.0  ;;  %v474_v41 = vadd.f32 %v595_v34, %v473_v38  ;;  %v637_v42 = vpop.f32.mrb[3].mxu1 }
 0x252   : > { %v478_v43 = vmax.f32 %v474_v41, 0.0  ;;  %v486_v44 = vmul.f32 %v601_v39, %v477_v40 }
 0x254   : > { %v489_v45 = vsel %vm488_vm9, %v486_v44, 0.0  ;;  %v487_v46 = vmul.f32 %v601_v39, %v478_v43 }
 0x255   : > { %490 = vadd.xlane.f32.xlu0 %v489_v45 }
 0x256   : > { %v492_v47 = vsel %vm488_vm9, %v487_v46, 0.0 }
 0x257   : > { %493 = vadd.xlane.f32.xlu1 %v492_v47 }
 0x2e2   : > { %v491_v49 = vpop.xlane.xlu0 %490 }
 0x2e3   : > { %v502_v50 = vadd.f32 %v602_v48, %v491_v49 }
 0x2e4   : > { %v494_v51 = vpop.xlane.xlu1 %493 }
 0x2e5   : > { %v603_v52 = vmul.f32 -1.442695, %v502_v50  ;;  %v503_v53 = vadd.f32 %v602_v48, %v494_v51 }
 0x2e7   : > { %660 = vpow2.f32 %v603_v52  ;;  %v604_v54 = vmul.f32 -1.442695, %v503_v53 }
 0x2e9   : > { %662 = vpow2.f32 %v604_v54 }
 0x2f1   : > { %v661_v55 = vpop.eup %660 }
 0x2f2   : > { %v510_v56 = vadd.f32 1.0, %v661_v55 }
 0x2f3   : > { %v663_v57 = vpop.eup %662 }
 0x2f4   : > { %664 = vrcp.f32 %v510_v56  ;;  %v511_v58 = vadd.f32 1.0, %v663_v57 }
 0x2f6   : > { %666 = vrcp.f32 %v511_v58 }
 0x2fe   : > { %v665_v59 = vpop.eup %664 }
 0x2ff   : > { %v516_v60 = vmul.f32 4.0, %v665_v59 }
 0x300   : > { %v667_v61 = vpop.eup %666 }
 0x301   : > { %v518_v62 = vadd.f32 1.0, %v516_v60  ;;  %v517_v63 = vmul.f32 4.0, %v667_v61 }
 0x303   : > { %521 = vst.msk [vmem:[%s282_s10] sm:$0xff] %vm520_vm10, %v518_v62  ;;  %v519_v0 = vadd.f32 1.0, %v517_v63 }
 0x305   : > { %522 = vst.msk [vmem:[%s282_s10 + $0x8] sm:$0xff] %vm520_vm10, %v519_v0 }
 0x306 PF: > { %s19_s26 = sadd.s32 1, %s674_s26  }
 0x307   : > { %p16_p4 = scmp.ge.s32.totalorder %s19_s26, 4  }
 0x309   :  { %18 = sbr.rel (!%p16_p4) target bundleno = 3 (0x3), region = 78 }

</bundles_post_ra>
